<compile_context>
chip_gen: v7x
topology: tpu7x:2x2x1
jax: 0.10.0
libtpu: 0.0.40
codegen_flags: <defaults>
</compile_context>

<pallas_src>
import functools

import jax
import jax.numpy as jnp
import numpy as np
from jax.experimental import pallas as pl
from jax.experimental.pallas import tpu as pltpu


def _round_up(x, m):
    return ((x + m - 1) // m) * m


def _mlp_kernel(x_ref, w1_ref, b1_ref, w2_ref, b2_ref, w3_ref, b3_ref, o_ref):
    # x tile: (block_b, state_dim) -> transpose once so batch lives on the lane axis.
    x_t = x_ref[...].T                                              # (state_dim, block_b)

    # Layer 1: (h1, state_dim) @ (state_dim, block_b) on the MXU, f32 accumulate.
    h1 = jnp.dot(w1_ref[...], x_t, preferred_element_type=jnp.float32) + b1_ref[...]
    h1 = jnp.maximum(h1, 0.0)                                       # ReLU

    # Layer 2: (h2, h1) @ (h1, block_b).
    h2 = jnp.dot(w2_ref[...], h1, preferred_element_type=jnp.float32) + b2_ref[...]
    h2 = jnp.maximum(h2, 0.0)                                       # ReLU

    # Final layer (out_dim = 1): VPU multiply + sublane reduce instead of an N=1
    # MXU matmul.  Result is already lane-dense: (1, block_b).
    out = jnp.sum(h2 * w3_ref[...], axis=0, keepdims=True) + b3_ref[...]

    o_ref[...] = out.reshape(o_ref.shape).astype(o_ref.dtype)


@functools.partial(jax.jit, static_argnames=("block_b",))
def reward_model_forward(state, params, block_b=2048):
    """state: (B, state_dim) f32.  params: dict of w1,b1,w2,b2,w3,b3 (see header)."""
    B, state_dim = state.shape
    h1_dim = params["w1"].shape[0]
    h2_dim = params["w2"].shape[0]

    # Lane-align the batch tile (multiple of 128) and never exceed the padded batch.
    b_min = _round_up(B, 128)
    block_b = min(_round_up(block_b, 128), b_min)
    # Prefer >=2 grid steps when the batch is big enough (v7x megacore sharding).
    if b_min // block_b <= 1 and b_min >= 256:
        block_b = _round_up(pl.cdiv(b_min, 2), 128)

    grid_b = pl.cdiv(B, block_b)
    B_pad = grid_b * block_b
    state_p = state if B_pad == B else jnp.pad(state, ((0, B_pad - B), (0, 0)))

    # Weights/biases stay fully resident (index_map always returns block (0, 0)).
    full = lambda shape: pl.BlockSpec(shape, lambda i: (0, 0))

    out3 = pl.pallas_call(
        _mlp_kernel,
        out_shape=jax.ShapeDtypeStruct((grid_b, 1, block_b), jnp.float32),
        grid_spec=pltpu.PrefetchScalarGridSpec(
            num_scalar_prefetch=0,
            grid=(grid_b,),
            in_specs=[
                pl.BlockSpec((block_b, state_dim), lambda i: (i, 0)),  # x tile
                full((h1_dim, state_dim)),                             # w1 (out,in)
                full((h1_dim, 1)),                                     # b1 (out,1)
                full((h2_dim, h1_dim)),                                # w2 (out,in)
                full((h2_dim, 1)),                                     # b2 (out,1)
                full((h2_dim, 1)),                                     # w3 (in,1)
                full((1, 1)),                                          # b3 (1,1)
            ],
            # Lane-dense output: one (1, block_b) row per grid step, unmasked stores.
            out_specs=pl.BlockSpec((1, 1, block_b), lambda i: (i, 0, 0)),
        ),
        compiler_params=pltpu.CompilerParams(
            dimension_semantics=("parallel",)),
    )(state_p, params["w1"], params["b1"], params["w2"], params["b2"],
      params["w3"], params["b3"])

    # (grid_b, 1, block_b) -> (B, 1); contiguous reshape + slice off batch padding.
    return out3.reshape(-1)[:B].reshape(B, 1)


def init_params(key, state_dim, hidden_units=(32, 32)):
    """Torch-style nn.Linear init (uniform +/- 1/sqrt(fan_in)).

    Hidden layers: w (out,in), b (out,1).  Final layer: w stored as (in,1), b (1,1).
    """
    dims = [state_dim] + list(hidden_units)
    params = {}
    for idx, (fan_in, fan_out) in enumerate(zip(dims[:-1], dims[1:]), start=1):
        key, kw, kb = jax.random.split(key, 3)
        bound = 1.0 / np.sqrt(fan_in)
        params[f"w{idx}"] = jax.random.uniform(
            kw, (fan_out, fan_in), jnp.float32, -bound, bound)
        params[f"b{idx}"] = jax.random.uniform(
            kb, (fan_out, 1), jnp.float32, -bound, bound)
    # Final (out_dim = 1) layer, weight kept as a column (in, 1).
    fan_in = dims[-1]
    n = len(dims)
    key, kw, kb = jax.random.split(key, 3)
    bound = 1.0 / np.sqrt(fan_in)
    params[f"w{n}"] = jax.random.uniform(kw, (fan_in, 1), jnp.float32, -bound, bound)
    params[f"b{n}"] = jax.random.uniform(kb, (1, 1), jnp.float32, -bound, bound)
    return params


def reward_model_reference(state, params):
    h = jnp.maximum(state @ params["w1"].T + params["b1"].T, 0.0)
    h = jnp.maximum(h @ params["w2"].T + params["b2"].T, 0.0)
    return h @ params["w3"] + params["b3"]


if __name__ == "__main__":
    key = jax.random.PRNGKey(0)
    k_param, k_state = jax.random.split(key)

    batch, state_dim = 8, 16
    params = init_params(k_param, state_dim, hidden_units=(32, 32))
    state = jax.random.normal(k_state, (batch, state_dim), jnp.float32)

    out = reward_model_forward(state, params)
    out = jax.block_until_ready(out)

    ref = reward_model_reference(state, params)
    np.testing.assert_allclose(np.asarray(out), np.asarray(ref),
                               rtol=1e-5, atol=1e-5)
    assert out.shape == (batch, 1)
    print("KERNEL_OK")
</pallas_src>

<mosaic_0001>
module attributes {stable_mosaic.version = 11 : i64} {
  func.func @_mlp_kernel(%arg0: i32, %arg1: memref<128x16xf32, #tpu.memory_space<vmem>>, %arg2: memref<32x16xf32, #tpu.memory_space<vmem>>, %arg3: memref<32x1xf32, #tpu.memory_space<vmem>>, %arg4: memref<32x32xf32, #tpu.memory_space<vmem>>, %arg5: memref<32x1xf32, #tpu.memory_space<vmem>>, %arg6: memref<32x1xf32, #tpu.memory_space<vmem>>, %arg7: memref<1x1xf32, #tpu.memory_space<vmem>>, %arg8: memref<1x1x128xf32, #tpu.memory_space<vmem>>) attributes {dimension_semantics = [#tpu.dimension_semantics<parallel>], iteration_bounds = array<i64: 1>, scalar_prefetch = 0 : i64, scratch_operands = 0 : i64, tpu.core_type = #tpu.core_type<tc>, window_params = [{transform_indices = @transform_0, window_bounds = array<i64: 128, 16>}, {pipeline_mode = #tpu.pipeline_mode<synchronous>, transform_indices = @transform_1, window_bounds = array<i64: 32, 16>}, {pipeline_mode = #tpu.pipeline_mode<synchronous>, transform_indices = @transform_2, window_bounds = array<i64: 32, 1>}, {pipeline_mode = #tpu.pipeline_mode<synchronous>, transform_indices = @transform_3, window_bounds = array<i64: 32, 32>}, {pipeline_mode = #tpu.pipeline_mode<synchronous>, transform_indices = @transform_4, window_bounds = array<i64: 32, 1>}, {pipeline_mode = #tpu.pipeline_mode<synchronous>, transform_indices = @transform_5, window_bounds = array<i64: 32, 1>}, {pipeline_mode = #tpu.pipeline_mode<synchronous>, transform_indices = @transform_6, window_bounds = array<i64: 1, 1>}, {transform_indices = @transform_7, window_bounds = array<i64: 1, 1, 128>}]} {
    %c0 = arith.constant 0 : index
    %c0_0 = arith.constant 0 : index
    %0 = vector.load %arg1[%c0, %c0_0] : memref<128x16xf32, #tpu.memory_space<vmem>>, vector<128x16xf32>
    %1 = tpu.transpose %0, [1, 0] : vector<128x16xf32> -> vector<16x128xf32>
    %c0_1 = arith.constant 0 : index
    %c0_2 = arith.constant 0 : index
    %2 = vector.load %arg2[%c0_1, %c0_2] : memref<32x16xf32, #tpu.memory_space<vmem>>, vector<32x16xf32>
    %cst = arith.constant dense<0.000000e+00> : vector<32x128xf32>
    %3 = tpu.matmul %2, %1, %cst {dimension_numbers = #tpu.dot_dimension_numbers<[1], [0], [0], [1], [0, 0, 1, 1], [], []>} : vector<32x16xf32>, vector<16x128xf32>, vector<32x128xf32> -> vector<32x128xf32>
    %c0_3 = arith.constant 0 : index
    %c0_4 = arith.constant 0 : index
    %4 = vector.load %arg3[%c0_3, %c0_4] : memref<32x1xf32, #tpu.memory_space<vmem>>, vector<32x1xf32>
    %5 = vector.broadcast %4 : vector<32x1xf32> to vector<32x128xf32>
    %6 = arith.addf %3, %5 : vector<32x128xf32>
    %cst_5 = arith.constant 0.000000e+00 : f32
    %7 = vector.broadcast %cst_5 : f32 to vector<32x128xf32>
    %8 = arith.maximumf %6, %7 : vector<32x128xf32>
    %c0_6 = arith.constant 0 : index
    %c0_7 = arith.constant 0 : index
    %9 = vector.load %arg4[%c0_6, %c0_7] : memref<32x32xf32, #tpu.memory_space<vmem>>, vector<32x32xf32>
    %cst_8 = arith.constant dense<0.000000e+00> : vector<32x128xf32>
    %10 = tpu.matmul %9, %8, %cst_8 {dimension_numbers = #tpu.dot_dimension_numbers<[1], [0], [0], [1], [0, 0, 1, 1], [], []>} : vector<32x32xf32>, vector<32x128xf32>, vector<32x128xf32> -> vector<32x128xf32>
    %c0_9 = arith.constant 0 : index
    %c0_10 = arith.constant 0 : index
    %11 = vector.load %arg5[%c0_9, %c0_10] : memref<32x1xf32, #tpu.memory_space<vmem>>, vector<32x1xf32>
    %12 = vector.broadcast %11 : vector<32x1xf32> to vector<32x128xf32>
    %13 = arith.addf %10, %12 : vector<32x128xf32>
    %cst_11 = arith.constant 0.000000e+00 : f32
    %14 = vector.broadcast %cst_11 : f32 to vector<32x128xf32>
    %15 = arith.maximumf %13, %14 : vector<32x128xf32>
    %c0_12 = arith.constant 0 : index
    %c0_13 = arith.constant 0 : index
    %16 = vector.load %arg6[%c0_12, %c0_13] : memref<32x1xf32, #tpu.memory_space<vmem>>, vector<32x1xf32>
    %17 = vector.broadcast %16 : vector<32x1xf32> to vector<32x128xf32>
    %18 = arith.mulf %15, %17 : vector<32x128xf32>
    %cst_14 = arith.constant dense<0.000000e+00> : vector<128xf32>
    %19 = vector.multi_reduction <add>, %18, %cst_14 [0] : vector<32x128xf32> to vector<128xf32>
    %20 = vector.shape_cast %19 : vector<128xf32> to vector<1x128xf32>
    %c0_15 = arith.constant 0 : index
    %c0_16 = arith.constant 0 : index
    %21 = vector.load %arg7[%c0_15, %c0_16] : memref<1x1xf32, #tpu.memory_space<vmem>>, vector<1x1xf32>
    %22 = vector.broadcast %21 : vector<1x1xf32> to vector<1x128xf32>
    %23 = arith.addf %20, %22 : vector<1x128xf32>
    %24 = vector.shape_cast %23 : vector<1x128xf32> to vector<1x1x128xf32>
    %c0_17 = arith.constant 0 : index
    %c0_18 = arith.constant 0 : index
    %c0_19 = arith.constant 0 : index
    %25 = vector.load %arg8[%c0_17, %c0_18, %c0_19] : memref<1x1x128xf32, #tpu.memory_space<vmem>>, vector<1x1x128xf32>
    tpu.vector_store %arg8[%c0_17, %c0_18, %c0_19], %24 {strides = array<i32>} : memref<1x1x128xf32, #tpu.memory_space<vmem>>, vector<1x1x128xf32>,
    return
  }
  func.func @transform_0(%arg0: i32) -> (i32, i32) {
    %c0_i32 = arith.constant 0 : i32
    %c0_i32_0 = arith.constant 0 : i32
    return %arg0, %c0_i32 : i32, i32
  }
  func.func @transform_1(%arg0: i32) -> (i32, i32) {
    %c0_i32 = arith.constant 0 : i32
    %c0_i32_0 = arith.constant 0 : i32
    %c0_i32_1 = arith.constant 0 : i32
    return %c0_i32, %c0_i32_0 : i32, i32
  }
  func.func @transform_2(%arg0: i32) -> (i32, i32) {
    %c0_i32 = arith.constant 0 : i32
    %c0_i32_0 = arith.constant 0 : i32
    %c0_i32_1 = arith.constant 0 : i32
    return %c0_i32, %c0_i32_0 : i32, i32
  }
  func.func @transform_3(%arg0: i32) -> (i32, i32) {
    %c0_i32 = arith.constant 0 : i32
    %c0_i32_0 = arith.constant 0 : i32
    %c0_i32_1 = arith.constant 0 : i32
    return %c0_i32, %c0_i32_0 : i32, i32
  }
  func.func @transform_4(%arg0: i32) -> (i32, i32) {
    %c0_i32 = arith.constant 0 : i32
    %c0_i32_0 = arith.constant 0 : i32
    %c0_i32_1 = arith.constant 0 : i32
    return %c0_i32, %c0_i32_0 : i32, i32
  }
  func.func @transform_5(%arg0: i32) -> (i32, i32) {
    %c0_i32 = arith.constant 0 : i32
    %c0_i32_0 = arith.constant 0 : i32
    %c0_i32_1 = arith.constant 0 : i32
    return %c0_i32, %c0_i32_0 : i32, i32
  }
  func.func @transform_6(%arg0: i32) -> (i32, i32) {
    %c0_i32 = arith.constant 0 : i32
    %c0_i32_0 = arith.constant 0 : i32
    %c0_i32_1 = arith.constant 0 : i32
    return %c0_i32, %c0_i32_0 : i32, i32
  }
  func.func @transform_7(%arg0: i32) -> (i32, i32, i32) {
    %c0_i32 = arith.constant 0 : i32
    %c0_i32_0 = arith.constant 0 : i32
    %c0_i32_1 = arith.constant 0 : i32
    return %arg0, %c0_i32, %c0_i32_0 : i32, i32, i32
  }
}

</mosaic_0001>

<bundles_post_ra>
// kernel: reward_model_forward.1
= control target key start
LH: loop header
LB: loop body
LE: loop exit
PB: predicated region body
PF: predicated region fallthrough
CT: control target
= control target key end

     0   :  { %vm72_vm0 = vcmask 130048   ;;  %v568_v3 = vmov 0   ;;  %vm250_vm2 = vcmask 261120   ;;  %s769_s0 = inlined_call_operand.vmem [shape: f32[128,16], index: 0, kind: input, shape index: {}]   ;;  %s770_s6 = inlined_call_operand.<no memory space> [shape: f32[1,1], index: 6, kind: input, shape index: {}]   ;;  %s771_s1 = inlined_call_operand.vmem [shape: f32[32,16], index: 1, kind: input, shape index: {}]   ;;  %s772_s2 = inlined_call_operand.vmem [shape: f32[32,1], index: 2, kind: input, shape index: {}]   ;;  %s773_s4 = inlined_call_operand.vmem [shape: f32[32,1], index: 4, kind: input, shape index: {}]   ;;  %s774_s5 = inlined_call_operand.vmem [shape: f32[32,1], index: 5, kind: input, shape index: {}]   ;;  %s775_s3 = inlined_call_operand.vmem [shape: f32[32,32], index: 3, kind: input, shape index: {}]   ;;  %s776_s7 = inlined_call_operand.vmem [shape: f32[1,1,128], index: 7, kind: output, shape index: {}]  }
   0x1   :  { %v28_v0 = vld [vmem:[%s769_s0] sm:$0xff]  ;;  %v29_v1 = vld [vmem:[%s769_s0 + $0x8] sm:$0xff]  ;;  %vm617_vm1 = vmpackc.low %vm72_vm0, %vm72_vm0  ;;  %566 = vset.pattern.permute.xlu0 %v568_v3  ;;  %567 = vset.pattern.permute.xlu1 %v568_v3  ;;  %v12_v4 = vstv %s770_s6 }
   0x2   :  { %v509_v5 = vpack.c.bf16 %v29_v1, %v28_v0  ;;  %v30_v6 = vld [vmem:[%s769_s0 + $0x10] sm:$0xff]  ;;  %v31_v7 = vld [vmem:[%s769_s0 + $0x18] sm:$0xff]  ;;  %13 = vst [vmem:[#allocation2] sm:$0x1] %v12_v4  ;;  %v44_v9 = vld [vmem:[%s771_s1] sm:$0xff] }
   0x3   :  { %v515_v8 = vpack.c.bf16 %v31_v7, %v30_v6  ;;  %v32_v10 = vld [vmem:[%s769_s0 + $0x20] sm:$0xff]  ;;  %v33_v11 = vld [vmem:[%s769_s0 + $0x28] sm:$0xff]  ;;  %489 = vmatprep.mubr.msk.f32.mxu0 %vm72_vm0, %v44_v9  ;;  %v50_v13 = vld [vmem:[%s772_s2 + $0x10] sm:$0xff] }
   0x4   :  { %511 = vmatprep.subr.msk.bf16.mxu0 %vm617_vm1, %v509_v5  ;;  %v48_v12 = vld [vmem:[%s772_s2] sm:$0xff]  ;;  %64 = vperm.xlu1 %567, %v50_v13   ;;  %v521_v14 = vpack.c.bf16 %v33_v11, %v32_v10  ;;  %v49_v15 = vld [vmem:[%s772_s2 + $0x8] sm:$0xff]  ;;  %v51_v16 = vld [vmem:[%s772_s2 + $0x18] sm:$0xff] }
   0x5   :  { %514 = vmatpush3.bf16.xpose.msk.msra.mxu0 %vm617_vm1, %v509_v5  ;;  %54 = vperm.xlu0 %566, %v48_v12   ;;  %v226_v17 = vld [vmem:[%s773_s4] sm:$0xff]  ;;  %v34_v18 = vld [vmem:[%s769_s0 + $0x30] sm:$0xff]  ;;  %v35_v19 = vld [vmem:[%s769_s0 + $0x38] sm:$0xff] }
   0x6   :  { %517 = vmatprep.subr.msk.bf16.mxu0 %vm617_vm1, %v515_v8  ;;  %v227_v20 = vld [vmem:[%s773_s4 + $0x8] sm:$0xff]  ;;  %v527_v21 = vpack.c.bf16 %v35_v19, %v34_v18  ;;  %v228_v22 = vld [vmem:[%s773_s4 + $0x10] sm:$0xff]  ;;  %v229_v23 = vld [vmem:[%s773_s4 + $0x18] sm:$0xff] }
   0x7   :  { %v352_v24 = vld [vmem:[%s774_s5] sm:$0xff]  ;;  %v37_v26 = vld [vmem:[%s769_s0 + $0x48] sm:$0xff]  ;;  %v354_v29 = vld [vmem:[%s774_s5 + $0x10] sm:$0xff] }
   0x8   :  { %69 = vperm.xlu1 %567, %v51_v16   ;;  %v36_v25 = vld [vmem:[%s769_s0 + $0x40] sm:$0xff]  ;;  %v353_v27 = vld [vmem:[%s774_s5 + $0x8] sm:$0xff]  ;;  %v355_v30 = vld [vmem:[%s774_s5 + $0x18] sm:$0xff] }
   0x9   :  { %59 = vperm.xlu0 %566, %v49_v15   ;;  %v533_v28 = vpack.c.bf16 %v37_v26, %v36_v25  ;;  %v389_v31 = vld [vmem:[#allocation2] sm:$0x1]  ;;  %v38_v32 = vld [vmem:[%s769_s0 + $0x50] sm:$0xff]  ;;  %v39_v33 = vld [vmem:[%s769_s0 + $0x58] sm:$0xff] }
   0xa   :  { %v539_v34 = vpack.c.bf16 %v39_v33, %v38_v32  ;;  %v40_v35 = vld [vmem:[%s769_s0 + $0x60] sm:$0xff]  ;;  %v41_v36 = vld [vmem:[%s769_s0 + $0x68] sm:$0xff]  ;;  %v42_v38 = vld [vmem:[%s769_s0 + $0x70] sm:$0xff] }
   0xb   :  { %v545_v37 = vpack.c.bf16 %v41_v36, %v40_v35  ;;  %v43_v39 = vld [vmem:[%s769_s0 + $0x78] sm:$0xff]  ;;  %v45_v41 = vld [vmem:[%s771_s1 + $0x8] sm:$0xff]  ;;  %v46_v42 = vld [vmem:[%s771_s1 + $0x10] sm:$0xff] }
   0xc   :  { %237 = vperm.xlu1 %567, %v227_v20   ;;  %v551_v40 = vpack.c.bf16 %v43_v39, %v42_v38  ;;  %v47_v43 = vld [vmem:[%s771_s1 + $0x18] sm:$0xff]  ;;  %v222_v44 = vld [vmem:[%s775_s3] sm:$0xff]  ;;  %v223_v63 = vld [vmem:[%s775_s3 + $0x8] sm:$0xff] }
   0xd   :  { %520 = vmatpush3.bf16.xpose.msk.msra.mxu0 %vm617_vm1, %v515_v8  ;;  %232 = vperm.xlu0 %566, %v226_v17   ;;  %v224_v0 = vld [vmem:[%s775_s3 + $0x10] sm:$0xff]  ;;  %v225_v1 = vld [vmem:[%s775_s3 + $0x18] sm:$0xff] }
   0xe   :  { %523 = vmatprep.subr.msk.bf16.mxu0 %vm617_vm1, %v521_v14  ;;  %503 = vmatprep.mubr.msk.f32.mxu1 %vm250_vm2, %v222_v44 }
  0x10   :  { %247 = vperm.xlu1 %567, %v229_v23  }
  0x11   :  { %242 = vperm.xlu0 %566, %v228_v22  }
  0x14   :  { %363 = vperm.xlu1 %567, %v353_v27  }
  0x15   :  { %526 = vmatpush3.bf16.xpose.msk.msra.mxu0 %vm617_vm1, %v521_v14  ;;  %358 = vperm.xlu0 %566, %v352_v24  }
  0x16   :  { %529 = vmatprep.subr.msk.bf16.mxu0 %vm617_vm1, %v527_v21 }
  0x18   :  { %373 = vperm.xlu1 %567, %v355_v30  }
  0x19   :  { %368 = vperm.xlu0 %566, %v354_v29  }
  0x1d   :  { %532 = vmatpush3.bf16.xpose.msk.msra.mxu0 %vm617_vm1, %v527_v21  ;;  %392 = vperm.xlu0 %566, %v389_v31  }
  0x1e   :  { %535 = vmatprep.subr.msk.bf16.mxu0 %vm617_vm1, %v533_v28 }
  0x25   :  { %538 = vmatpush3.bf16.xpose.msk.msra.mxu0 %vm617_vm1, %v533_v28  ;;  %v395_v28 = vlaneseq }
  0x26   :  { %541 = vmatprep.subr.msk.bf16.mxu0 %vm617_vm1, %v539_v34 }
  0x27   :  { %v396_v31 = vshrl.u32 %v395_v28, 7 }
  0x2d   :  { %544 = vmatpush3.bf16.xpose.msk.msra.mxu0 %vm617_vm1, %v539_v34  ;;  %v397_v34 = vsub.s32 0, %v396_v31 }
  0x2e   :  { %547 = vmatprep.subr.msk.bf16.mxu0 %vm617_vm1, %v545_v37 }
  0x35   :  { %550 = vmatpush3.bf16.xpose.msk.msra.mxu0 %vm617_vm1, %v545_v37 }
  0x36   :  { %553 = vmatprep.subr.msk.bf16.mxu0 %vm617_vm1, %v551_v40 }
  0x3d   :  { %556 = vmatpush3.bf16.xpose.msk.msra.mxu0 %vm617_vm1, %v551_v40 }
  0x44   :  { %490 = vmatmul.mubr.msk.f32.vlgmr.msra.gmra.mrb[0].mxu0 %vm72_vm0, %v45_v41 }
  0x45   :  { %492 = vmatprep.mubr.msk.f32.mxu0 %vm72_vm0, %v46_v42 }
  0x48   :  { %493 = vmatmul.mubr.msk.f32.gmra.mrb[2].mxu0 %vm72_vm0, %v47_v43 }
  0x83   :  { %v65_v46 = vpop.permute.xlu1 %64 }
  0x84   :  { %v55_v45 = vpop.permute.xlu0 %54 }
  0x87   :  { %v70_v53 = vpop.permute.xlu1 %69 }
  0x88   :  { %v60_v47 = vpop.permute.xlu0 %59 }
  0x8b   :  { %v238_v3 = vpop.permute.xlu1 %237 }
  0x8c   :  { %v233_v2 = vpop.permute.xlu0 %232 }
  0x8f   :  { %v248_v5 = vpop.permute.xlu1 %247 }
  0x90   :  { %v243_v4 = vpop.permute.xlu0 %242 }
  0x93   :  { %v364_v12 = vpop.permute.xlu1 %363 }
  0x94   :  { %v359_v10 = vpop.permute.xlu0 %358 }
  0x97   :  { %v374_v25 = vpop.permute.xlu1 %373 }
  0x98   :  { %v369_v23 = vpop.permute.xlu0 %368 }
  0x9c   :  { %v393_v36 = vpop.permute.xlu0 %392 }
  0x9d   :  { %v398_v38 = vrot.slane %v393_v36, %v397_v34 }
 0x117   :  { %v491_v48 = vpop.f32.mrb[0].mxu0 }
 0x118   :  { %v205_v49 = vadd.f32 %v491_v48, %v60_v47  ;;  %v199_v50 = vpop.f32.mrb[1].mxu0 }
 0x119   :  { %v200_v51 = vadd.f32 %v199_v50, %v55_v45 }
 0x11a   :  { %v219_v52 = vmax.f32 %v205_v49, 0.0 }
 0x11b   :  { %v218_v54 = vmax.f32 %v200_v51, 0.0  ;;  %v494_v55 = vpop.f32.mrb[2].mxu0 }
 0x11c   :  { %v215_v56 = vadd.f32 %v494_v55, %v70_v53  ;;  %v209_v57 = vpop.f32.mrb[3].mxu0 }
 0x11d   :  { %v210_v58 = vadd.f32 %v209_v57, %v65_v46  ;;  %v557_v59 = vpack.c.bf16 %v219_v52, %v218_v54 }
 0x11e   :  { %v221_v60 = vmax.f32 %v215_v56, 0.0 }
 0x11f   :  { %v220_v61 = vmax.f32 %v210_v58, 0.0  ;;  %558 = vmatprep.subr.bf16.mxu1 %v557_v59 }
 0x120   :  { %560 = vmatpush3.bf16.msra.mxu1 %v557_v59 }
 0x121   :  { %v561_v62 = vpack.c.bf16 %v221_v60, %v220_v61 }
 0x123   :  { %562 = vmatprep.subr.bf16.mxu1 %v561_v62 }
 0x124   :  { %564 = vmatpush3.bf16.msra.mxu1 %v561_v62 }
 0x127   :  { %504 = vmatmul.mubr.msk.f32.vlgmr.msra.gmra.mrb[0].mxu1 %vm250_vm2, %v223_v63 }
 0x128   :  { %506 = vmatprep.mubr.msk.f32.mxu1 %vm250_vm2, %v224_v0 }
 0x12b   :  { %507 = vmatmul.mubr.msk.f32.gmra.mrb[2].mxu1 %vm250_vm2, %v225_v1 }
 0x1fa   :  { %v505_v6 = vpop.f32.mrb[0].mxu1 }
 0x1fb   :  { %v335_v7 = vadd.f32 %v505_v6, %v238_v3  ;;  %v329_v8 = vpop.f32.mrb[1].mxu1 }
 0x1fc   :  { %v330_v9 = vadd.f32 %v329_v8, %v233_v2 }
 0x1fd   :  { %v349_v11 = vmax.f32 %v335_v7, 0.0 }
 0x1fe   :  { %v348_v13 = vmax.f32 %v330_v9, 0.0  ;;  %v508_v14 = vpop.f32.mrb[2].mxu1 }
 0x1ff   :  { %v377_v15 = vmul.f32 %v364_v12, %v349_v11  ;;  %v345_v16 = vadd.f32 %v508_v14, %v248_v5  ;;  %v339_v17 = vpop.f32.mrb[3].mxu1 }
 0x200   :  { %v376_v18 = vmul.f32 %v359_v10, %v348_v13  ;;  %v340_v19 = vadd.f32 %v339_v17, %v243_v4 }
 0x201   :  { %v351_v21 = vmax.f32 %v345_v16, 0.0 }
 0x202   :  { %v380_v20 = vadd.f32 %v377_v15, %v376_v18  ;;  %v350_v22 = vmax.f32 %v340_v19, 0.0 }
 0x203   :  { %v379_v26 = vmul.f32 %v374_v25, %v351_v21 }
 0x204   :  { %v378_v24 = vmul.f32 %v369_v23, %v350_v22 }
 0x206   :  { %v381_v27 = vadd.f32 %v380_v20, %v378_v24 }
 0x208   :  { %v382_v29 = vadd.f32 %v381_v27, %v379_v26 }
 0x20a   :  { %v383_v30 = vrot.slane %v382_v29, 4 }
 0x20c   :  { %v384_v32 = vadd.f32 %v383_v30, %v382_v29 }
 0x20e   :  { %v385_v33 = vrot.slane %v384_v32, 2 }
 0x210   :  { %v386_v35 = vadd.f32 %v385_v33, %v384_v32 }
 0x212   :  { %v387_v37 = vrot.slane %v386_v35, 1 }
 0x214   :  { %v388_v39 = vadd.f32 %v387_v37, %v386_v35 }
 0x216   :  { %v399_v40 = vadd.f32 %v398_v38, %v388_v39 }
 0x218   :  { %400 = vst [vmem:[%s776_s7] sm:$0x1] %v399_v40 }

</bundles_post_ra>
